<compile_context>
chip_gen: v5e
topology: v5e:2x2
jax: 0.10.0
libtpu: 0.0.40
codegen_flags: <defaults>
</compile_context>

<pallas_src>
import functools

import jax
import jax.numpy as jnp
from jax.experimental import pallas as pl
from jax.experimental.pallas import tpu as pltpu

FEATURES_PER_FRAME = 30
OUTPUT_DIM = 512
CONTEXT = 5
BN_EPS = 1e-5
LEAKY_SLOPE = 0.01  # nn.LeakyReLU() default negative_slope


def _cdiv(a, b):
    return (a + b - 1) // b


def _round_up(a, b):
    return _cdiv(a, b) * b


def _vmem_limit_bytes(tile_m, out_elem_bytes):
    """Scoped-VMEM request: at least the 32 MiB default, capped under v7x's 64 MiB physical."""
    k_pad = _round_up(CONTEXT * FEATURES_PER_FRAME, 128)       # K=150 lane-padded to 256 (bf16)
    a_buf = 2 * tile_m * k_pad * 2                             # double-buffered bf16 A tile
    w_buf = k_pad * OUTPUT_DIM * 2                             # resident bf16 weights
    o_buf = 2 * tile_m * OUTPUT_DIM * out_elem_bytes           # double-buffered output tile
    est = a_buf + w_buf + o_buf + (1 << 20)
    return int(min(56 * 1024 * 1024, max(32 * 1024 * 1024, 2 * est)))


def _stats_kernel(a_ref, w_ref, b_ref, sum_ref, sq_ref):
    """Pass 1: y = LeakyReLU(A @ W + b); accumulate shifted per-channel sums.

    Sums are of d = y - c with c = LeakyReLU(b), the exact value a zero (padded) input row
    produces, so padded rows contribute exactly 0 (no masking) and the variance formula is
    better conditioned.  Partials are kept as (8, N) sublane-aligned accumulators.
    """
    @pl.when(pl.program_id(1) == 0)
    def _():
        sum_ref[...] = jnp.zeros_like(sum_ref)
        sq_ref[...] = jnp.zeros_like(sq_ref)

    b = b_ref[...]                                     # (1, N) f32
    c = jnp.maximum(b, LEAKY_SLOPE * b)                # zero-input (padded-row) activation
    y = jnp.dot(a_ref[...], w_ref[...], preferred_element_type=jnp.float32) + b
    y = jnp.maximum(y, LEAKY_SLOPE * y)                # LeakyReLU
    d = y - c

    tm, n = d.shape
    d3 = d.reshape(tm // 8, 8, n)                      # maps directly onto (8,128) VMEM tiles
    sum_ref[...] += jnp.sum(d3, axis=0)[None]          # (1, 8, N) partial sums (VPU adds only)
    sq_ref[...] += jnp.sum(d3 * d3, axis=0)[None]


def _apply_kernel(a_ref, w_ref, p_ref, o_ref):
    """Pass 2: o = LeakyReLU(A @ W + bias) * scale + shift  (BN folded into scale/shift)."""
    p = p_ref[...]                                     # (3, N): [bias; scale; shift]
    bias, scale, shift = p[0:1, :], p[1:2, :], p[2:3, :]
    y = jnp.dot(a_ref[...], w_ref[...], preferred_element_type=jnp.float32) + bias
    y = jnp.maximum(y, LEAKY_SLOPE * y)                # LeakyReLU; Dropout(p=0.0) is identity
    o_ref[...] = (y * scale + shift).astype(o_ref.dtype)


@functools.partial(jax.jit, static_argnames=("tile_m", "n_split", "out_dtype"))
def xtdnn_ilayer_forward(x, conv_w, conv_b, bn_gamma, bn_beta, *,
                         tile_m=2048, n_split=2, out_dtype=jnp.float32):
    """x: (B, T, 30) float32.  Returns (B, T-4, 512) `out_dtype` (train-mode BN, fresh module)."""
    B, T, D = x.shape
    assert D == FEATURES_PER_FRAME
    t_out = T - (CONTEXT - 1)
    M = B * t_out
    K = CONTEXT * D
    N = OUTPUT_DIM

    # One M-tile size for both passes; clamp for tiny problems, keep a multiple of 16
    # (bf16 sublane packing) so block shapes stay layout-friendly.
    tile_m = _round_up(max(16, min(tile_m, _round_up(_cdiv(M, n_split), 16))), 16)
    m_pad = _round_up(M, tile_m * n_split)
    m_tiles = m_pad // tile_m
    m_tiles_split = m_tiles // n_split

    # --- glue: im2col unfold into bf16 matmul operands (cast before padding) ---
    # A[b*t_out + t, k*D + i] = x[b, t + k, i];  W_mat[k*D + i, o] = conv_w[o, i, k]
    frames = jnp.stack([x[:, k:k + t_out, :] for k in range(CONTEXT)], axis=2)  # (B, t_out, 5, D)
    a_mat = frames.reshape(M, K).astype(jnp.bfloat16)
    a_mat = jnp.pad(a_mat, ((0, m_pad - M), (0, 0)))
    w_mat = jnp.transpose(conv_w, (2, 1, 0)).reshape(K, N).astype(jnp.bfloat16)
    b_row = conv_b.reshape(1, N).astype(jnp.float32)

    # --- pass 1: BN batch statistics; M split across cores (v7x megacore), then M-tiled ---
    sum_out, sq_out = pl.pallas_call(
        _stats_kernel,
        out_shape=(jax.ShapeDtypeStruct((n_split, 8, N), jnp.float32),
                   jax.ShapeDtypeStruct((n_split, 8, N), jnp.float32)),
        grid=(n_split, m_tiles_split),
        in_specs=[
            pl.BlockSpec((tile_m, K), lambda c, i: (c * m_tiles_split + i, 0)),  # A tile (bf16)
            pl.BlockSpec((K, N), lambda c, i: (0, 0)),       # full W resident (~154 KB bf16)
            pl.BlockSpec((1, N), lambda c, i: (0, 0)),       # conv bias, resident
        ],
        out_specs=[
            pl.BlockSpec((1, 8, N), lambda c, i: (c, 0, 0)),  # per-split shifted sum
            pl.BlockSpec((1, 8, N), lambda c, i: (c, 0, 0)),  # per-split shifted sum of squares
        ],
        compiler_params=pltpu.CompilerParams(
            dimension_semantics=("parallel", "arbitrary"),
            vmem_limit_bytes=_vmem_limit_bytes(tile_m, 0)),
    )(a_mat, w_mat, b_row)

    # --- glue: fold BN (training mode, biased variance) into per-channel scale/shift ---
    c = jnp.maximum(conv_b, LEAKY_SLOPE * conv_b)            # shift used by the stats kernel
    s1 = jnp.sum(sum_out, axis=(0, 1))                       # (N,)
    s2 = jnp.sum(sq_out, axis=(0, 1))
    mean_d = s1 / M
    var = jnp.maximum(s2 / M - mean_d * mean_d, 0.0)         # Var(y) = Var(y - c)
    mean = c + mean_d
    inv_std = jax.lax.rsqrt(var + BN_EPS)
    scale = bn_gamma * inv_std
    shift = bn_beta - mean * scale
    params = jnp.stack([conv_b, scale, shift]).astype(jnp.float32)  # (3, N) merged params

    # --- pass 2: recompute conv tile, apply fused bias/LeakyReLU/BN epilogue ---
    out = pl.pallas_call(
        _apply_kernel,
        out_shape=jax.ShapeDtypeStruct((m_pad, N), out_dtype),
        grid=(m_tiles,),
        in_specs=[
            pl.BlockSpec((tile_m, K), lambda i: (i, 0)),     # A tile (bf16), read exactly once
            pl.BlockSpec((K, N), lambda i: (0, 0)),          # full W resident
            pl.BlockSpec((3, N), lambda i: (0, 0)),          # merged [bias; scale; shift]
        ],
        out_specs=pl.BlockSpec((tile_m, N), lambda i: (i, 0)),
        compiler_params=pltpu.CompilerParams(
            dimension_semantics=("parallel",),
            vmem_limit_bytes=_vmem_limit_bytes(tile_m, jnp.dtype(out_dtype).itemsize)),
    )(a_mat, w_mat, params)

    return out[:M].reshape(B, t_out, N)


def reference_forward(x, conv_w, conv_b, bn_gamma, bn_beta):
    """Pure-JAX reference mirroring the PyTorch forward (train-mode BN).
    Matmul operands are cast to bf16 to match the kernel's MXU precision."""
    B, T, D = x.shape
    t_out = T - (CONTEXT - 1)
    frames = jnp.stack([x[:, k:k + t_out, :] for k in range(CONTEXT)], axis=2)
    a = frames.reshape(B * t_out, CONTEXT * D).astype(jnp.bfloat16)
    w = jnp.transpose(conv_w, (2, 1, 0)).reshape(CONTEXT * D, OUTPUT_DIM).astype(jnp.bfloat16)
    y = jnp.dot(a, w, preferred_element_type=jnp.float32) + conv_b[None, :]
    y = jnp.where(y >= 0, y, LEAKY_SLOPE * y)
    mean = jnp.mean(y, axis=0, keepdims=True)
    var = jnp.mean((y - mean) ** 2, axis=0, keepdims=True)   # biased var, as BN uses
    y = (y - mean) * jax.lax.rsqrt(var + BN_EPS) * bn_gamma[None, :] + bn_beta[None, :]
    return y.reshape(B, t_out, OUTPUT_DIM)


if __name__ == "__main__":
    key = jax.random.PRNGKey(0)
    k_x, k_x2, k_w, k_b, k_g, k_be = jax.random.split(key, 6)

    # Deterministic synthetic parameters (shapes from nn.Conv1d(30, 512, 5) / BatchNorm1d(512)).
    conv_w = 0.05 * jax.random.normal(k_w, (OUTPUT_DIM, FEATURES_PER_FRAME, CONTEXT), jnp.float32)
    conv_b = 0.1 * jax.random.normal(k_b, (OUTPUT_DIM,), jnp.float32)
    bn_gamma = 1.0 + 0.1 * jax.random.normal(k_g, (OUTPUT_DIM,), jnp.float32)
    bn_beta = 0.1 * jax.random.normal(k_be, (OUTPUT_DIM,), jnp.float32)

    # Case 1: B=2, T=16 -> new_seq_len=12 (one M tile per core split, padded rows present).
    x = jax.random.normal(k_x, (2, 16, FEATURES_PER_FRAME), jnp.float32)
    ref = jax.block_until_ready(reference_forward(x, conv_w, conv_b, bn_gamma, bn_beta))
    out = jax.block_until_ready(xtdnn_ilayer_forward(x, conv_w, conv_b, bn_gamma, bn_beta))
    assert out.shape == (2, 12, OUTPUT_DIM), out.shape
    assert jnp.allclose(out, ref, atol=1e-3, rtol=1e-3), float(jnp.max(jnp.abs(out - ref)))

    # Case 2: odd M with a tiny tile -> multiple M tiles per core split + padded final tile.
    x2 = jax.random.normal(k_x2, (3, 23, FEATURES_PER_FRAME), jnp.float32)
    ref2 = jax.block_until_ready(reference_forward(x2, conv_w, conv_b, bn_gamma, bn_beta))
    out2 = jax.block_until_ready(
        xtdnn_ilayer_forward(x2, conv_w, conv_b, bn_gamma, bn_beta, tile_m=16))
    assert out2.shape == (3, 19, OUTPUT_DIM), out2.shape
    assert jnp.allclose(out2, ref2, atol=1e-3, rtol=1e-3), float(jnp.max(jnp.abs(out2 - ref2)))

    # Case 3: bf16 output option (for downstream layers that cast to bf16 anyway).
    out3 = jax.block_until_ready(
        xtdnn_ilayer_forward(x, conv_w, conv_b, bn_gamma, bn_beta, out_dtype=jnp.bfloat16))
    assert out3.dtype == jnp.bfloat16
    assert jnp.allclose(out3.astype(jnp.float32), ref, atol=6e-2, rtol=6e-2), \
        float(jnp.max(jnp.abs(out3.astype(jnp.float32) - ref)))

    print("KERNEL_OK")
</pallas_src>

<mosaic_0001>
module attributes {stable_mosaic.version = 11 : i64} {
  func.func @_stats_kernel(%arg0: i32, %arg1: i32, %arg2: memref<16x150xbf16, #tpu.memory_space<vmem>>, %arg3: memref<150x512xbf16, #tpu.memory_space<vmem>>, %arg4: memref<1x512xf32, #tpu.memory_space<vmem>>, %arg5: memref<1x8x512xf32, #tpu.memory_space<vmem>>, %arg6: memref<1x8x512xf32, #tpu.memory_space<vmem>>) attributes {dimension_semantics = [#tpu.dimension_semantics<parallel>, #tpu.dimension_semantics<arbitrary>], iteration_bounds = array<i64: 2, 1>, scalar_prefetch = 0 : i64, scratch_operands = 0 : i64, tpu.core_type = #tpu.core_type<tc>, window_params = [{transform_indices = @transform_0, window_bounds = array<i64: 16, 150>}, {pipeline_mode = #tpu.pipeline_mode<synchronous>, transform_indices = @transform_1, window_bounds = array<i64: 150, 512>}, {pipeline_mode = #tpu.pipeline_mode<synchronous>, transform_indices = @transform_2, window_bounds = array<i64: 1, 512>}, {transform_indices = @transform_3, window_bounds = array<i64: 1, 8, 512>}, {transform_indices = @transform_4, window_bounds = array<i64: 1, 8, 512>}]} {
    %c0_i32 = arith.constant 0 : i32
    %0 = arith.cmpi eq, %arg1, %c0_i32 : i32
    %1 = arith.extui %0 : i1 to i32
    %c0_i32_0 = arith.constant 0 : i32
    %2 = arith.cmpi ne, %1, %c0_i32_0 : i32
    scf.if %2 {
      %cst_22 = arith.constant 0.000000e+00 : f32
      %29 = vector.broadcast %cst_22 : f32 to vector<1x8x512xf32>
      %c0_23 = arith.constant 0 : index
      %c0_24 = arith.constant 0 : index
      %c0_25 = arith.constant 0 : index
      %30 = vector.load %arg5[%c0_23, %c0_24, %c0_25] : memref<1x8x512xf32, #tpu.memory_space<vmem>>, vector<1x8x512xf32>
      tpu.vector_store %arg5[%c0_23, %c0_24, %c0_25], %29 {strides = array<i32>} : memref<1x8x512xf32, #tpu.memory_space<vmem>>, vector<1x8x512xf32>,
      %cst_26 = arith.constant 0.000000e+00 : f32
      %31 = vector.broadcast %cst_26 : f32 to vector<1x8x512xf32>
      %c0_27 = arith.constant 0 : index
      %c0_28 = arith.constant 0 : index
      %c0_29 = arith.constant 0 : index
      %32 = vector.load %arg6[%c0_27, %c0_28, %c0_29] : memref<1x8x512xf32, #tpu.memory_space<vmem>>, vector<1x8x512xf32>
      tpu.vector_store %arg6[%c0_27, %c0_28, %c0_29], %31 {strides = array<i32>} : memref<1x8x512xf32, #tpu.memory_space<vmem>>, vector<1x8x512xf32>,
    } else {
    }
    %c0 = arith.constant 0 : index
    %c0_1 = arith.constant 0 : index
    %3 = vector.load %arg4[%c0, %c0_1] : memref<1x512xf32, #tpu.memory_space<vmem>>, vector<1x512xf32>
    %cst = arith.constant 0.00999999977 : f32
    %4 = vector.broadcast %cst : f32 to vector<1x512xf32>
    %5 = arith.mulf %4, %3 : vector<1x512xf32>
    %6 = arith.maximumf %3, %5 : vector<1x512xf32>
    %c0_2 = arith.constant 0 : index
    %c0_3 = arith.constant 0 : index
    %7 = vector.load %arg2[%c0_2, %c0_3] : memref<16x150xbf16, #tpu.memory_space<vmem>>, vector<16x150xbf16>
    %c0_4 = arith.constant 0 : index
    %c0_5 = arith.constant 0 : index
    %8 = vector.load %arg3[%c0_4, %c0_5] : memref<150x512xbf16, #tpu.memory_space<vmem>>, vector<150x512xbf16>
    %cst_6 = arith.constant dense<0.000000e+00> : vector<16x512xf32>
    %9 = tpu.matmul %7, %8, %cst_6 {dimension_numbers = #tpu.dot_dimension_numbers<[1], [0], [0], [1], [0, 0, 1, 1], [], []>} : vector<16x150xbf16>, vector<150x512xbf16>, vector<16x512xf32> -> vector<16x512xf32>
    %10 = vector.broadcast %3 : vector<1x512xf32> to vector<16x512xf32>
    %11 = arith.addf %9, %10 : vector<16x512xf32>
    %cst_7 = arith.constant 0.00999999977 : f32
    %12 = vector.broadcast %cst_7 : f32 to vector<16x512xf32>
    %13 = arith.mulf %12, %11 : vector<16x512xf32>
    %14 = arith.maximumf %11, %13 : vector<16x512xf32>
    %15 = vector.broadcast %6 : vector<1x512xf32> to vector<16x512xf32>
    %16 = arith.subf %14, %15 : vector<16x512xf32>
    %17 = vector.shape_cast %16 : vector<16x512xf32> to vector<2x8x512xf32>
    %c0_8 = arith.constant 0 : index
    %c0_9 = arith.constant 0 : index
    %c0_10 = arith.constant 0 : index
    %18 = vector.load %arg5[%c0_8, %c0_9, %c0_10] : memref<1x8x512xf32, #tpu.memory_space<vmem>>, vector<1x8x512xf32>
    %cst_11 = arith.constant dense<0.000000e+00> : vector<8x512xf32>
    %19 = vector.multi_reduction <add>, %17, %cst_11 [0] : vector<2x8x512xf32> to vector<8x512xf32>
    %20 = vector.shape_cast %19 : vector<8x512xf32> to vector<1x8x512xf32>
    %21 = arith.addf %18, %20 : vector<1x8x512xf32>
    %c0_12 = arith.constant 0 : index
    %c0_13 = arith.constant 0 : index
    %c0_14 = arith.constant 0 : index
    %22 = vector.load %arg5[%c0_12, %c0_13, %c0_14] : memref<1x8x512xf32, #tpu.memory_space<vmem>>, vector<1x8x512xf32>
    tpu.vector_store %arg5[%c0_12, %c0_13, %c0_14], %21 {strides = array<i32>} : memref<1x8x512xf32, #tpu.memory_space<vmem>>, vector<1x8x512xf32>,
    %c0_15 = arith.constant 0 : index
    %c0_16 = arith.constant 0 : index
    %c0_17 = arith.constant 0 : index
    %23 = vector.load %arg6[%c0_15, %c0_16, %c0_17] : memref<1x8x512xf32, #tpu.memory_space<vmem>>, vector<1x8x512xf32>
    %24 = arith.mulf %17, %17 : vector<2x8x512xf32>
    %cst_18 = arith.constant dense<0.000000e+00> : vector<8x512xf32>
    %25 = vector.multi_reduction <add>, %24, %cst_18 [0] : vector<2x8x512xf32> to vector<8x512xf32>
    %26 = vector.shape_cast %25 : vector<8x512xf32> to vector<1x8x512xf32>
    %27 = arith.addf %23, %26 : vector<1x8x512xf32>
    %c0_19 = arith.constant 0 : index
    %c0_20 = arith.constant 0 : index
    %c0_21 = arith.constant 0 : index
    %28 = vector.load %arg6[%c0_19, %c0_20, %c0_21] : memref<1x8x512xf32, #tpu.memory_space<vmem>>, vector<1x8x512xf32>
    tpu.vector_store %arg6[%c0_19, %c0_20, %c0_21], %27 {strides = array<i32>} : memref<1x8x512xf32, #tpu.memory_space<vmem>>, vector<1x8x512xf32>,
    return
  }
  func.func @transform_0(%arg0: i32, %arg1: i32) -> (i32, i32) {
    %c1_i32 = arith.constant 1 : i32
    %0 = arith.muli %arg0, %c1_i32 : i32
    %1 = arith.addi %0, %arg1 : i32
    %c0_i32 = arith.constant 0 : i32
    %c0_i32_0 = arith.constant 0 : i32
    return %1, %c0_i32 : i32, i32
  }
  func.func @transform_1(%arg0: i32, %arg1: i32) -> (i32, i32) {
    %c0_i32 = arith.constant 0 : i32
    %c0_i32_0 = arith.constant 0 : i32
    %c0_i32_1 = arith.constant 0 : i32
    return %c0_i32, %c0_i32_0 : i32, i32
  }
  func.func @transform_2(%arg0: i32, %arg1: i32) -> (i32, i32) {
    %c0_i32 = arith.constant 0 : i32
    %c0_i32_0 = arith.constant 0 : i32
    %c0_i32_1 = arith.constant 0 : i32
    return %c0_i32, %c0_i32_0 : i32, i32
  }
  func.func @transform_3(%arg0: i32, %arg1: i32) -> (i32, i32, i32) {
    %c0_i32 = arith.constant 0 : i32
    %c0_i32_0 = arith.constant 0 : i32
    %c0_i32_1 = arith.constant 0 : i32
    return %arg0, %c0_i32, %c0_i32_0 : i32, i32, i32
  }
  func.func @transform_4(%arg0: i32, %arg1: i32) -> (i32, i32, i32) {
    %c0_i32 = arith.constant 0 : i32
    %c0_i32_0 = arith.constant 0 : i32
    %c0_i32_1 = arith.constant 0 : i32
    return %arg0, %c0_i32, %c0_i32_0 : i32, i32, i32
  }
}

module attributes {stable_mosaic.version = 11 : i64} {
  func.func @_apply_kernel(%arg0: i32, %arg1: memref<16x150xbf16, #tpu.memory_space<vmem>>, %arg2: memref<150x512xbf16, #tpu.memory_space<vmem>>, %arg3: memref<3x512xf32, #tpu.memory_space<vmem>>, %arg4: memref<16x512xf32, #tpu.memory_space<vmem>>) attributes {dimension_semantics = [#tpu.dimension_semantics<parallel>], iteration_bounds = array<i64: 2>, scalar_prefetch = 0 : i64, scratch_operands = 0 : i64, tpu.core_type = #tpu.core_type<tc>, window_params = [{transform_indices = @transform_0, window_bounds = array<i64: 16, 150>}, {pipeline_mode = #tpu.pipeline_mode<synchronous>, transform_indices = @transform_1, window_bounds = array<i64: 150, 512>}, {pipeline_mode = #tpu.pipeline_mode<synchronous>, transform_indices = @transform_2, window_bounds = array<i64: 3, 512>}, {transform_indices = @transform_3, window_bounds = array<i64: 16, 512>}]} {
    %c0 = arith.constant 0 : index
    %c0_0 = arith.constant 0 : index
    %0 = vector.load %arg3[%c0, %c0_0] : memref<3x512xf32, #tpu.memory_space<vmem>>, vector<3x512xf32>
    %1 = vector.extract_strided_slice %0 {offsets = [0, 0], sizes = [1, 512], strides = [1, 1]} : vector<3x512xf32> to vector<1x512xf32>
    %2 = vector.extract_strided_slice %0 {offsets = [1, 0], sizes = [1, 512], strides = [1, 1]} : vector<3x512xf32> to vector<1x512xf32>
    %3 = vector.extract_strided_slice %0 {offsets = [2, 0], sizes = [1, 512], strides = [1, 1]} : vector<3x512xf32> to vector<1x512xf32>
    %c0_1 = arith.constant 0 : index
    %c0_2 = arith.constant 0 : index
    %4 = vector.load %arg1[%c0_1, %c0_2] : memref<16x150xbf16, #tpu.memory_space<vmem>>, vector<16x150xbf16>
    %c0_3 = arith.constant 0 : index
    %c0_4 = arith.constant 0 : index
    %5 = vector.load %arg2[%c0_3, %c0_4] : memref<150x512xbf16, #tpu.memory_space<vmem>>, vector<150x512xbf16>
    %cst = arith.constant dense<0.000000e+00> : vector<16x512xf32>
    %6 = tpu.matmul %4, %5, %cst {dimension_numbers = #tpu.dot_dimension_numbers<[1], [0], [0], [1], [0, 0, 1, 1], [], []>} : vector<16x150xbf16>, vector<150x512xbf16>, vector<16x512xf32> -> vector<16x512xf32>
    %7 = vector.broadcast %1 : vector<1x512xf32> to vector<16x512xf32>
    %8 = arith.addf %6, %7 : vector<16x512xf32>
    %cst_5 = arith.constant 0.00999999977 : f32
    %9 = vector.broadcast %cst_5 : f32 to vector<16x512xf32>
    %10 = arith.mulf %9, %8 : vector<16x512xf32>
    %11 = arith.maximumf %8, %10 : vector<16x512xf32>
    %12 = vector.broadcast %2 : vector<1x512xf32> to vector<16x512xf32>
    %13 = arith.mulf %11, %12 : vector<16x512xf32>
    %14 = vector.broadcast %3 : vector<1x512xf32> to vector<16x512xf32>
    %15 = arith.addf %13, %14 : vector<16x512xf32>
    %c0_6 = arith.constant 0 : index
    %c0_7 = arith.constant 0 : index
    %16 = vector.load %arg4[%c0_6, %c0_7] : memref<16x512xf32, #tpu.memory_space<vmem>>, vector<16x512xf32>
    tpu.vector_store %arg4[%c0_6, %c0_7], %15 {strides = array<i32>} : memref<16x512xf32, #tpu.memory_space<vmem>>, vector<16x512xf32>,
    return
  }
  func.func @transform_0(%arg0: i32) -> (i32, i32) {
    %c0_i32 = arith.constant 0 : i32
    %c0_i32_0 = arith.constant 0 : i32
    return %arg0, %c0_i32 : i32, i32
  }
  func.func @transform_1(%arg0: i32) -> (i32, i32) {
    %c0_i32 = arith.constant 0 : i32
    %c0_i32_0 = arith.constant 0 : i32
    %c0_i32_1 = arith.constant 0 : i32
    return %c0_i32, %c0_i32_0 : i32, i32
  }
  func.func @transform_2(%arg0: i32) -> (i32, i32) {
    %c0_i32 = arith.constant 0 : i32
    %c0_i32_0 = arith.constant 0 : i32
    %c0_i32_1 = arith.constant 0 : i32
    return %c0_i32, %c0_i32_0 : i32, i32
  }
  func.func @transform_3(%arg0: i32) -> (i32, i32) {
    %c0_i32 = arith.constant 0 : i32
    %c0_i32_0 = arith.constant 0 : i32
    return %arg0, %c0_i32 : i32, i32
  }
}

</mosaic_0001>

<bundles_post_ra>
// kernel: xtdnn_ilayer_forward.2
= control target key start
LH: loop header
LB: loop body
LE: loop exit
PB: predicated region body
PF: predicated region fallthrough
CT: control target
= control target key end

     0   :  { %s1082_s15 = smov 0   ;;  %s1084_s16 = smov 0   ;;  %s1412_s0 = inlined_call_operand.vmem [shape: bf16[32,150], index: 0, kind: input, shape index: {}]   ;;  %s1413_s1 = inlined_call_operand.vmem [shape: bf16[150,512], index: 1, kind: input, shape index: {}]   ;;  %s1414_s2 = inlined_call_operand.vmem [shape: f32[1,512], index: 2, kind: input, shape index: {}]   ;;  %s1415_s3 = inlined_call_operand.vmem [shape: f32[2,8,512], index: 3, kind: output, shape index: {0}]   ;;  %s1416_s4 = inlined_call_operand.vmem [shape: f32[2,8,512], index: 4, kind: output, shape index: {1}]  }
   0x1   :  { %s1086_s17 = smov 0  }
   0x2 LB: > { %s27_s18 = sadd.s32 1, %s1051_s16  ;;  %p801_p0 = scmp.ge.s32.totalorder %s1055_s17, 1  ;;  %s1055_s17 = sphi %s1086_s17, %s15_s17   ;;  %s1051_s16 = sphi %s1084_s16, %s1419_s16   ;;  %s1047_s15 = sphi %s1082_s15, %s1418_s15  }
   0x3   : > { %p29_p1 = scmp.ge.s32.totalorder %s27_s18, 2  ;;  %p183_p2 = scmp.lt.s32.totalorder %s1055_s17, 3 }
   0x5   : > { %s1421_s18 = smov (%p29_p1, %s27_s18), 0  ;;  %p184_p3 = pnand %p801_p0, %p183_p2 }
   0x6   : > { %s802_s13 = sshll.u32 (!%p184_p3), %s1047_s15, 1  ;;  %p225_p5 = scmp.lt.s32.totalorder (!%p184_p3), %s1047_s15, 1 }
   0x7   : > { %187 = sbr.rel (%p184_p3) target bundleno = 218 (0xda), region = 32  ;;  %p1209_p4 = scmp.lt.s32.totalorder (!%p184_p3), %s802_s13, 3 }
   0xc   : > { %v931_v0 = vld [vmem:[%s1413_s1 + $0xe0] sm:$0xf]  ;;  %v1002_v1 = vld [vmem:[%s1413_s1 + $0xec] sm:$0xf0]  ;;  %v1000_v2 = vld [vmem:[%s1413_s1 + $0xe4] sm:$0xf] }
   0xd   : > { %v932_v3 = vor.u32 %v1002_v1, %v931_v0  ;;  %v933_v4 = vld [vmem:[%s1413_s1 + $0xf0] sm:$0xf0]  ;;  %v1117_v5 = vld [vmem:[%s1413_s1 + $0x120] sm:$0x77]  ;;  %vm503_vm0 = vcmask 1042432   ;;  %s1423_s13 = smov (!%p1209_p4, %s802_s13), 3 }
   0xe   : > { %v936_v6 = vor.u32 %v1000_v2, %v933_v4  ;;  %v419_v7 = vunpack.c.l.b16 %v1117_v5  ;;  %v1123_v8 = vld [vmem:[%s1413_s1 + $0x128] sm:$0x77]  ;;  %v915_v9 = vld [vmem:[%s1413_s1 + $0xc0] sm:$0xf]  ;;  %v998_v10 = vld [vmem:[%s1413_s1 + $0xcc] sm:$0xf0] }
   0xf   : > { %516 = vmatpush.bf16.msra.mxu0 %v932_v3  ;;  %v421_v11 = vunpack.c.l.b16 %v1123_v8  ;;  %v916_v12 = vor.u32 %v998_v10, %v915_v9  ;;  %v996_v13 = vld [vmem:[%s1413_s1 + $0xc4] sm:$0xf]  ;;  %v917_v14 = vld [vmem:[%s1413_s1 + $0xd0] sm:$0xf0]  ;;  %v947_v15 = vld [vmem:[%s1413_s1 + $0x100] sm:$0xf] }
  0x10   : > { %544 = vmatpush.bf16.msra.mxu2 %v936_v6  ;;  %v459_v16 = vpack.c.b16 %v419_v7, %v419_v7  ;;  %v920_v17 = vor.u32 %v996_v13, %v917_v14  ;;  %v1006_v18 = vld [vmem:[%s1413_s1 + $0x10c] sm:$0xf0]  ;;  %v955_v19 = vld [vmem:[%s1413_s1 + $0x108] sm:$0xf]  ;;  %v1007_v20 = vld [vmem:[%s1413_s1 + $0x114] sm:$0xf0]  ;;  %v422_v14 = vunpack.c.h.b16 %v1123_v8 }
  0x11   : > { %v461_v21 = vpack.c.b16 %v421_v11, %v421_v11  ;;  %v899_v22 = vld [vmem:[%s1413_s1 + $0xa0] sm:$0xf]  ;;  %v994_v23 = vld [vmem:[%s1413_s1 + $0xac] sm:$0xf0]  ;;  %v992_v24 = vld [vmem:[%s1413_s1 + $0xa4] sm:$0xf]  ;;  %v948_v29 = vor.u32 %v1006_v18, %v947_v15  ;;  %v956_v33 = vor.u32 %v1007_v20, %v955_v19 }
  0x12   : > { %v505_v25 = vsel %vm503_vm0, %v459_v16, 0  ;;  %v901_v26 = vld [vmem:[%s1413_s1 + $0xb0] sm:$0xf0]  ;;  %v939_v27 = vld [vmem:[%s1413_s1 + $0xe8] sm:$0xf]  ;;  %v900_v30 = vor.u32 %v994_v23, %v899_v22  ;;  %s967_s27 = sshll.u32 %s1423_s13, 3 }
  0x13   : > { %536 = vmatpush.bf16.msra.mxu1 %v505_v25  ;;  %v511_v28 = vsel %vm503_vm0, %v461_v21, 0  ;;  %517 = vmatpush.bf16.msra.mxu0 %v916_v12  ;;  %v1003_v31 = vld [vmem:[%s1413_s1 + $0xf4] sm:$0xf0]  ;;  %v1001_v32 = vld [vmem:[%s1413_s1 + $0xec] sm:$0xf]  ;;  %v904_v34 = vor.u32 %v992_v24, %v901_v26  ;;  %s1262_s30 = scalar_lea.vmem %s1412_s0, %s967_s27  ;;  %vm499_vm1 = vcmask 179200   ;;  %v420_v24 = vunpack.c.h.b16 %v1117_v5 }
  0x14   : > { %592 = vmatpush.bf16.msra.mxu3 %v511_v28  ;;  %545 = vmatpush.bf16.msra.mxu2 %v920_v17  ;;  %v941_v35 = vld [vmem:[%s1413_s1 + $0xf8] sm:$0xf0]  ;;  %v883_v36 = vld [vmem:[%s1413_s1 + $0x80] sm:$0xf]  ;;  %v990_v37 = vld [vmem:[%s1413_s1 + $0x8c] sm:$0xf0]  ;;  %v940_v38 = vor.u32 %v1003_v31, %v939_v27  ;;  %v462_v28 = vpack.c.b16 %v422_v14, %v422_v14 }
  0x15   : > { %v944_v39 = vor.u32 %v1001_v32, %v941_v35  ;;  %v988_v40 = vld [vmem:[%s1413_s1 + $0x84] sm:$0xf]  ;;  %v885_v41 = vld [vmem:[%s1413_s1 + $0x90] sm:$0xf0]  ;;  %v923_v42 = vld [vmem:[%s1413_s1 + $0xc8] sm:$0xf]  ;;  %v884_v46 = vor.u32 %v990_v37, %v883_v36 }
  0x16   : > { %v999_v43 = vld [vmem:[%s1413_s1 + $0xd4] sm:$0xf0]  ;;  %v997_v44 = vld [vmem:[%s1413_s1 + $0xcc] sm:$0xf]  ;;  %v925_v45 = vld [vmem:[%s1413_s1 + $0xd8] sm:$0xf0]  ;;  %v888_v47 = vor.u32 %v988_v40, %v885_v41 }
  0x17   : > { %537 = vmatpush.bf16.msra.mxu1 %v948_v29  ;;  %518 = vmatpush.bf16.msra.mxu0 %v900_v30  ;;  %v867_v48 = vld [vmem:[%s1413_s1 + $0x60] sm:$0xf]  ;;  %v986_v49 = vld [vmem:[%s1413_s1 + $0x6c] sm:$0xf0]  ;;  %v924_v50 = vor.u32 %v999_v43, %v923_v42  ;;  %v928_v51 = vor.u32 %v997_v44, %v925_v45  ;;  %v984_v52 = vld [vmem:[%s1413_s1 + $0x64] sm:$0xf] }
  0x18   : > { %593 = vmatpush.bf16.msra.mxu3 %v956_v33  ;;  %546 = vmatpush.bf16.msra.mxu2 %v904_v34  ;;  %v869_v53 = vld [vmem:[%s1413_s1 + $0x70] sm:$0xf0]  ;;  %v907_v54 = vld [vmem:[%s1413_s1 + $0xa8] sm:$0xf]  ;;  %v995_v55 = vld [vmem:[%s1413_s1 + $0xb4] sm:$0xf0]  ;;  %v868_v58 = vor.u32 %v986_v49, %v867_v48 }
  0x19   : > { %v993_v56 = vld [vmem:[%s1413_s1 + $0xac] sm:$0xf]  ;;  %v909_v57 = vld [vmem:[%s1413_s1 + $0xb8] sm:$0xf0]  ;;  %v851_v59 = vld [vmem:[%s1413_s1 + $0x40] sm:$0xf]  ;;  %v872_v60 = vor.u32 %v984_v52, %v869_v53  ;;  %v908_v63 = vor.u32 %v995_v55, %v907_v54 }
  0x1a   : > { %v982_v61 = vld [vmem:[%s1413_s1 + $0x4c] sm:$0xf0]  ;;  %v980_v62 = vld [vmem:[%s1413_s1 + $0x44] sm:$0xf]  ;;  %v912_v0 = vor.u32 %v993_v56, %v909_v57  ;;  %v853_v1 = vld [vmem:[%s1413_s1 + $0x50] sm:$0xf0] }
  0x1b   : > { %572 = vmatpush.bf16.msrb.mxu1 %v940_v38  ;;  %519 = vmatpush.bf16.msra.mxu0 %v884_v46  ;;  %v891_v2 = vld [vmem:[%s1413_s1 + $0x88] sm:$0xf]  ;;  %v991_v3 = vld [vmem:[%s1413_s1 + $0x94] sm:$0xf0]  ;;  %v989_v4 = vld [vmem:[%s1413_s1 + $0x8c] sm:$0xf]  ;;  %v852_v7 = vor.u32 %v982_v61, %v851_v59  ;;  %v856_v10 = vor.u32 %v980_v62, %v853_v1 }
  0x1c   : > { %600 = vmatpush.bf16.msrb.mxu3 %v944_v39  ;;  %547 = vmatpush.bf16.msra.mxu2 %v888_v47  ;;  %v893_v6 = vld [vmem:[%s1413_s1 + $0x98] sm:$0xf0]  ;;  %v835_v9 = vld [vmem:[%s1413_s1 + $0x20] sm:$0xf]  ;;  %v970_v11 = vld [vmem:[%s1262_s30 + $0x4] sm:$0xf]  ;;  %v892_v15 = vor.u32 %v991_v3, %v891_v2  ;;  %v460_v39 = vpack.c.b16 %v420_v24, %v420_v24 }
  0x1d   : > { %v813_v12 = vld [vmem:[%s1262_s30 + $0x8] sm:$0xf0]  ;;  %v978_v13 = vld [vmem:[%s1413_s1 + $0x2c] sm:$0xf0]  ;;  %v896_v16 = vor.u32 %v989_v4, %v893_v6  ;;  %v976_v18 = vld [vmem:[%s1413_s1 + $0x24] sm:$0xf] }
  0x1e   : > { %v1273_v17 = vor.u32 %v970_v11, %v813_v12  ;;  %v837_v19 = vld [vmem:[%s1413_s1 + $0x30] sm:$0xf0]  ;;  %v875_v20 = vld [vmem:[%s1413_s1 + $0x68] sm:$0xf]  ;;  %v987_v8 = vld [vmem:[%s1413_s1 + $0x74] sm:$0xf0]  ;;  %v836_v23 = vor.u32 %v978_v13, %v835_v9 }
  0x1f   : > { %573 = vmatpush.bf16.msrb.mxu1 %v924_v50  ;;  %520 = vmatpush.bf16.msra.mxu0 %v868_v58  ;;  %v985_v21 = vld [vmem:[%s1413_s1 + $0x6c] sm:$0xf]  ;;  %v877_v22 = vld [vmem:[%s1413_s1 + $0x78] sm:$0xf0]  ;;  %v840_v25 = vor.u32 %v976_v18, %v837_v19  ;;  %v819_v26 = vld [vmem:[%s1413_s1] sm:$0xf]  ;;  %v876_v29 = vor.u32 %v987_v8, %v875_v20 }
  0x20   : > { %601 = vmatpush.bf16.msrb.mxu3 %v928_v51  ;;  %548 = vmatpush.bf16.msra.mxu2 %v872_v60  ;;  %v974_v27 = vld [vmem:[%s1413_s1 + $0xc] sm:$0xf0]  ;;  %v880_v5 = vor.u32 %v985_v21, %v877_v22  ;;  %v972_v30 = vld [vmem:[%s1413_s1 + $0x4] sm:$0xf]  ;;  %v821_v31 = vld [vmem:[%s1413_s1 + $0x10] sm:$0xf0] }
  0x21   : > { %963 = vmatmul.msk.bf16.vlgmr.msra.gmra.mxu3 %vm499_vm1, %v1273_v17  ;;  %961 = vmatmul.msk.bf16.vlgmr.msra.gmra.mxu1 %vm499_vm1, %v1273_v17  ;;  %v859_v32 = vld [vmem:[%s1413_s1 + $0x48] sm:$0xf]  ;;  %v983_v33 = vld [vmem:[%s1413_s1 + $0x54] sm:$0xf0]  ;;  %v981_v34 = vld [vmem:[%s1413_s1 + $0x4c] sm:$0xf]  ;;  %v820_v36 = vor.u32 %v974_v27, %v819_v26  ;;  %v824_v40 = vor.u32 %v972_v30, %v821_v31 }
  0x22   : > { %v861_v35 = vld [vmem:[%s1413_s1 + $0x58] sm:$0xf0]  ;;  %v811_v37 = vld [vmem:[%s1262_s30] sm:$0xf]  ;;  %v971_v38 = vld [vmem:[%s1262_s30 + $0x4] sm:$0xf0]  ;;  %v860_v42 = vor.u32 %v983_v33, %v859_v32 }
  0x23   : > { %574 = vmatpush.bf16.msrb.mxu1 %v908_v63  ;;  %521 = vmatpush.bf16.msra.mxu0 %v852_v7  ;;  %v514_v41 = vsel %vm503_vm0, %v462_v28, 0  ;;  %v864_v43 = vor.u32 %v981_v34, %v861_v35  ;;  %v843_v44 = vld [vmem:[%s1413_s1 + $0x28] sm:$0xf]  ;;  %v1005_v45 = vld [vmem:[%s1413_s1 + $0x10c] sm:$0xf]  ;;  %v812_v47 = vor.u32 %v971_v38, %v811_v37  ;;  %v508_v51 = vsel %vm503_vm0, %v460_v39, 0 }
  0x24   : > { %602 = vmatpush.bf16.msrb.mxu3 %v912_v0  ;;  %549 = vmatpush.bf16.msra.mxu2 %v856_v10  ;;  %v957_v46 = vld [vmem:[%s1413_s1 + $0x118] sm:$0xf0]  ;;  %v979_v48 = vld [vmem:[%s1413_s1 + $0x34] sm:$0xf0]  ;;  %v977_v49 = vld [vmem:[%s1413_s1 + $0x2c] sm:$0xf] }
  0x25   : > { %v845_v50 = vld [vmem:[%s1413_s1 + $0x38] sm:$0xf0]  ;;  %v1004_v52 = vld [vmem:[%s1413_s1 + $0x104] sm:$0xf]  ;;  %v949_v53 = vld [vmem:[%s1413_s1 + $0x110] sm:$0xf0]  ;;  %v960_v54 = vor.u32 %v1005_v45, %v957_v46  ;;  %v844_v55 = vor.u32 %v979_v48, %v843_v44 }
  0x26   : > { %v848_v56 = vor.u32 %v977_v49, %v845_v50  ;;  %v827_v57 = vld [vmem:[%s1413_s1 + $0x8] sm:$0xf]  ;;  %v975_v58 = vld [vmem:[%s1413_s1 + $0x14] sm:$0xf0]  ;;  %v973_v59 = vld [vmem:[%s1413_s1 + $0xc] sm:$0xf]  ;;  %v952_v61 = vor.u32 %v1004_v52, %v949_v53 }
  0x27   : > { %575 = vmatpush.bf16.msrb.mxu1 %v892_v15  ;;  %522 = vmatpush.bf16.msra.mxu0 %v836_v23  ;;  %v829_v60 = vld [vmem:[%s1413_s1 + $0x18] sm:$0xf0]  ;;  %v828_v62 = vor.u32 %v975_v58, %v827_v57  ;;  %v1369_v1 = vld [vmem:[%s1414_s2] sm:$0xf]  ;;  %s1425_s15 = smov (!%p225_p5, %s1047_s15), 1 }
  0x28   : > { %603 = vmatpush.bf16.msrb.mxu3 %v896_v16  ;;  %550 = vmatpush.bf16.msra.mxu2 %v840_v25  ;;  %v832_v63 = vor.u32 %v973_v59, %v829_v60  ;;  %v292_v2 = vperm.slane %v1369_v1, 0  ;;  %v249_v9 = vmul.f32 0.01, %v1369_v1  ;;  %v294_v14 = vperm.slane %v1369_v1, 2  ;;  %s968_s25 = sshll.u32 %s1425_s15, 5 }
  0x29   : > { %v295_v24 = vperm.slane %v1369_v1, 3  ;;  %v293_v32 = vperm.slane %v1369_v1, 1  ;;  %s1385_s26 = scalar_lea.vmem %s1415_s3, %s968_s25  ;;  %s1391_s28 = scalar_lea.vmem %s1416_s4, %s968_s25 }
  0x2a   : > { %v1374_v11 = vmax.f32 %v1369_v1, %v249_v9 }
  0x2b   : > { %576 = vmatpush.bf16.msrb.mxu1 %v876_v29  ;;  %523 = vmatpush.bf16.msra.mxu0 %v820_v36 }
  0x2c   : > { %604 = vmatpush.bf16.msrb.mxu3 %v880_v5  ;;  %551 = vmatpush.bf16.msra.mxu2 %v824_v40  ;;  %v645_v20 = vperm.slane %v1374_v11, 0  ;;  %v647_v38 = vperm.slane %v1374_v11, 2 }
  0x2e   : > { %524 = vmatmul.bf16.vlgmr.msra.gmra.mxu0 %v812_v47 }
  0x2f   : > { %620 = vmatpush.bf16.msrb.mxu0 %v514_v41  ;;  %577 = vmatpush.bf16.msrb.mxu1 %v860_v42 }
  0x30   : > { %605 = vmatpush.bf16.msrb.mxu3 %v864_v43  ;;  %564 = vmatpush.bf16.msrb.mxu2 %v508_v51 }
  0x31   : > { %552 = vmatmul.bf16.vlgmr.msra.gmra.mxu2 %v812_v47 }
  0x33   : > { %621 = vmatpush.bf16.msrb.mxu0 %v960_v54  ;;  %578 = vmatpush.bf16.msrb.mxu1 %v844_v55  ;;  %v648_v55 = vperm.slane %v1374_v11, 3 }
  0x34   : > { %606 = vmatpush.bf16.msrb.mxu3 %v848_v56  ;;  %565 = vmatpush.bf16.msrb.mxu2 %v952_v61 }
  0x37   : > { %579 = vmatpush.bf16.msrb.mxu1 %v828_v62 }
  0x38   : > { %607 = vmatpush.bf16.msrb.mxu3 %v832_v63 }
  0x3a   : > { %580 = vmatmul.bf16.vlgmr.msrb.gmra.mxu1 %v812_v47 }
  0x3b   : > { %608 = vmatmul.bf16.vlgmr.msrb.gmra.mxu3 %v812_v47 }
  0x3e   : > { %964 = vmatmul.msk.bf16.vlgmr.msrb.gmra.mxu0 %vm499_vm1, %v1273_v17 }
  0x41   : > { %962 = vmatmul.msk.bf16.vlgmr.msrb.gmra.mxu2 %vm499_vm1, %v1273_v17 }
  0x9e   : > { %v539_v0 = vpop.f32.mrf.mxu1 }
  0xa4   : > { %v595_v3 = vpop.f32.mrf.mxu3 }
  0xa6   : > { %v541_v6 = vpop.f32.mrf.mxu1 }
  0xab   : > { %v525_v4 = vpop.f32.mrf.mxu0 }
  0xac   : > { %v526_v7 = vadd.f32 %v525_v4, %v292_v2  ;;  %v597_v15 = vpop.f32.mrf.mxu3  ;;  %v646_v4 = vperm.slane %v1374_v11, 1 }
  0xae   : > { %v540_v10 = vadd.f32 %v539_v0, %v526_v7 }
  0xb0   : > { %v628_v12 = vmul.f32 0.01, %v540_v10 }
  0xb2   : > { %v636_v19 = vmax.f32 %v540_v10, %v628_v12 }
  0xb3   : > { %v527_v16 = vpop.f32.mrf.mxu0 }
  0xb4   : > { %v553_v13 = vpop.f32.mrf.mxu2  ;;  %v528_v17 = vadd.f32 %v527_v16, %v292_v2  ;;  %v653_v25 = vsub.f32 %v636_v19, %v645_v20 }
  0xb5   : > { %v554_v43 = vadd.f32 %v553_v13, %v293_v32 }
  0xb6   : > { %v542_v8 = vadd.f32 %v541_v6, %v528_v17  ;;  %v681_v34 = vmul.f32 %v653_v25, %v653_v25 }
  0xb7   : > { %v581_v18 = vpop.f32.mrf.mxu1 }
  0xb8   : > { %v582_v21 = vadd.f32 %v581_v18, %v294_v14  ;;  %v632_v22 = vmul.f32 0.01, %v542_v8 }
  0xba   : > { %v596_v23 = vadd.f32 %v595_v3, %v582_v21  ;;  %v640_v26 = vmax.f32 %v542_v8, %v632_v22 }
  0xbb   : > { %v623_v29 = vpop.f32.mrf.mxu0 }
  0xbc   : > { %v555_v27 = vpop.f32.mrf.mxu2  ;;  %v657_v5 = vsub.f32 %v640_v26, %v645_v20  ;;  %v630_v30 = vmul.f32 0.01, %v596_v23 }
  0xbd   : > { %v556_v62 = vadd.f32 %v555_v27, %v293_v32 }
  0xbe   : > { %v609_v28 = vpop.f32.mrf.mxu3  ;;  %v665_v35 = vadd.f32 %v657_v5, %v653_v25  ;;  %v685_v36 = vmul.f32 %v657_v5, %v657_v5  ;;  %v638_v41 = vmax.f32 %v596_v23, %v630_v30 }
  0xbf   : > { %v610_v31 = vadd.f32 %v609_v28, %v295_v24  ;;  %v583_v33 = vpop.f32.mrf.mxu1 }
  0xc0   : > { %v584_v37 = vadd.f32 %v583_v33, %v294_v14  ;;  %v689_v40 = vadd.f32 %v685_v36, %v681_v34  ;;  %673 = vst [vmem:[%s1385_s26] sm:$0xff] %v665_v35  ;;  %v655_v50 = vsub.f32 %v638_v41, %v647_v38 }
  0xc1   : > { %v624_v39 = vadd.f32 %v623_v29, %v610_v31 }
  0xc2   : > { %v598_v42 = vadd.f32 %v597_v15, %v584_v37  ;;  %697 = vst [vmem:[%s1391_s28] sm:$0xff] %v689_v40  ;;  %v683_v58 = vmul.f32 %v655_v50, %v655_v50 }
  0xc3   : > { %v631_v45 = vmul.f32 0.01, %v624_v39  ;;  %v625_v49 = vpop.f32.mrf.mxu0 }
  0xc4   : > { %v634_v44 = vmul.f32 0.01, %v598_v42  ;;  %v567_v46 = vpop.f32.mrf.mxu2 }
  0xc5   : > { %v568_v47 = vadd.f32 %v567_v46, %v554_v43  ;;  %v639_v54 = vmax.f32 %v624_v39, %v631_v45 }
  0xc6   : > { %v611_v48 = vpop.f32.mrf.mxu3  ;;  %v642_v51 = vmax.f32 %v598_v42, %v634_v44 }
  0xc7   : > { %v612_v52 = vadd.f32 %v611_v48, %v295_v24  ;;  %v629_v57 = vmul.f32 0.01, %v568_v47  ;;  %v656_v0 = vsub.f32 %v639_v54, %v648_v55 }
  0xc8   : > { %v659_v53 = vsub.f32 %v642_v51, %v647_v38 }
  0xc9   : > { %v626_v56 = vadd.f32 %v625_v49, %v612_v52  ;;  %v637_v3 = vmax.f32 %v568_v47, %v629_v57  ;;  %v684_v10 = vmul.f32 %v656_v0, %v656_v0 }
  0xca   : > { %v667_v59 = vadd.f32 %v659_v53, %v655_v50  ;;  %v687_v60 = vmul.f32 %v659_v53, %v659_v53 }
  0xcb   : > { %v635_v61 = vmul.f32 0.01, %v626_v56  ;;  %v654_v14 = vsub.f32 %v637_v3, %v646_v4 }
  0xcc   : > { %v691_v63 = vadd.f32 %v687_v60, %v683_v58  ;;  %v569_v2 = vpop.f32.mrf.mxu2  ;;  %675 = vst [vmem:[%s1385_s26 + $0x10] sm:$0xff] %v667_v59 }
  0xcd   : > { %v643_v1 = vmax.f32 %v626_v56, %v635_v61  ;;  %v570_v6 = vadd.f32 %v569_v2, %v556_v62  ;;  %v682_v18 = vmul.f32 %v654_v14, %v654_v14 }
  0xce   : > { %699 = vst [vmem:[%s1391_s28 + $0x10] sm:$0xff] %v691_v63 }
  0xcf   : > { %v660_v7 = vsub.f32 %v643_v1, %v648_v55  ;;  %v633_v9 = vmul.f32 0.01, %v570_v6 }
  0xd1   : > { %v668_v12 = vadd.f32 %v660_v7, %v656_v0  ;;  %v688_v13 = vmul.f32 %v660_v7, %v660_v7  ;;  %v641_v15 = vmax.f32 %v570_v6, %v633_v9 }
  0xd3   : > { %v692_v16 = vadd.f32 %v688_v13, %v684_v10  ;;  %v658_v17 = vsub.f32 %v641_v15, %v646_v4  ;;  %676 = vst [vmem:[%s1385_s26 + $0x18] sm:$0xff] %v668_v12 }
  0xd5   : > { %v666_v19 = vadd.f32 %v658_v17, %v654_v14  ;;  %v686_v20 = vmul.f32 %v658_v17, %v658_v17  ;;  %700 = vst [vmem:[%s1391_s28 + $0x18] sm:$0xff] %v692_v16 }
  0xd7   : > { %v690_v11 = vadd.f32 %v686_v20, %v682_v18  ;;  %674 = vst [vmem:[%s1385_s26 + $0x8] sm:$0xff] %v666_v19 }
  0xd9   : > { %698 = vst [vmem:[%s1391_s28 + $0x8] sm:$0xff] %v690_v11 }
  0xda PF: > { %s15_s17 = sadd.s32 1, %s1055_s17   ;;  %s1418_s15 = smov %s1051_s16 }
  0xdb   : > { %p12_p6 = scmp.ge.s32.totalorder %s15_s17, 4   ;;  %s1419_s16 = smov %s1421_s18 }
  0xdd   :  { %14 = sbr.rel (!%p12_p6) target bundleno = 2 (0x2), region = 78 }

// kernel: xtdnn_ilayer_forward.3
= control target key start
LH: loop header
LB: loop body
LE: loop exit
PB: predicated region body
PF: predicated region fallthrough
CT: control target
= control target key end

     0   :  { %s931_s12 = smov 0   ;;  %s1234_s0 = inlined_call_operand.vmem [shape: bf16[32,150], index: 0, kind: input, shape index: {}]   ;;  %s1235_s1 = inlined_call_operand.vmem [shape: bf16[150,512], index: 1, kind: input, shape index: {}]   ;;  %s1236_s2 = inlined_call_operand.vmem [shape: f32[3,512], index: 2, kind: input, shape index: {}]   ;;  %s1237_s3 = inlined_call_operand.vmem [shape: f32[32,512], index: 3, kind: output, shape index: {}]  }
   0x1 LB: > { %s686_s13 = sadd.s32 4294967295, %s909_s12   ;;  %p690_p0 = scmp.ge.s32.totalorder %s909_s12, 1  ;;  %s909_s12 = sphi %s931_s12, %s13_s12  }
   0x2   : > { %p139_p1 = scmp.lt.s32.totalorder %s909_s12, 3 }
   0x4   : > { %p140_p2 = pnand %p690_p0, %p139_p1 }
   0x5   : > { %s1012_s4 = sshll.u32 (!%p140_p2), %s686_s13, 1 }
   0x6   : > { %143 = sbr.rel (%p140_p2) target bundleno = 215 (0xd7), region = 32  ;;  %p166_p3 = scmp.lt.s32.totalorder (!%p140_p2), %s1012_s4, 3 }
   0xb   : > { %v819_v0 = vld [vmem:[%s1235_s1 + $0xe0] sm:$0xf]  ;;  %v889_v1 = vld [vmem:[%s1235_s1 + $0xec] sm:$0xf0]  ;;  %v887_v2 = vld [vmem:[%s1235_s1 + $0xe4] sm:$0xf] }
   0xc   : > { %v820_v3 = vor.u32 %v889_v1, %v819_v0  ;;  %v821_v4 = vld [vmem:[%s1235_s1 + $0xf0] sm:$0xf0]  ;;  %v954_v5 = vld [vmem:[%s1235_s1 + $0x120] sm:$0x77]  ;;  %vm439_vm0 = vcmask 1042432   ;;  %s1239_s4 = smov (!%p166_p3, %s1012_s4), 3 }
   0xd   : > { %v824_v6 = vor.u32 %v887_v2, %v821_v4  ;;  %v355_v7 = vunpack.c.l.b16 %v954_v5  ;;  %v960_v8 = vld [vmem:[%s1235_s1 + $0x128] sm:$0x77]  ;;  %v803_v9 = vld [vmem:[%s1235_s1 + $0xc0] sm:$0xf]  ;;  %v885_v10 = vld [vmem:[%s1235_s1 + $0xcc] sm:$0xf0] }
   0xe   : > { %452 = vmatpush.bf16.msra.mxu0 %v820_v3  ;;  %v357_v11 = vunpack.c.l.b16 %v960_v8  ;;  %v804_v12 = vor.u32 %v885_v10, %v803_v9  ;;  %v883_v13 = vld [vmem:[%s1235_s1 + $0xc4] sm:$0xf]  ;;  %v805_v14 = vld [vmem:[%s1235_s1 + $0xd0] sm:$0xf0]  ;;  %v835_v15 = vld [vmem:[%s1235_s1 + $0x100] sm:$0xf] }
   0xf   : > { %480 = vmatpush.bf16.msra.mxu2 %v824_v6  ;;  %v395_v16 = vpack.c.b16 %v355_v7, %v355_v7  ;;  %v808_v17 = vor.u32 %v883_v13, %v805_v14  ;;  %v893_v18 = vld [vmem:[%s1235_s1 + $0x10c] sm:$0xf0]  ;;  %v843_v19 = vld [vmem:[%s1235_s1 + $0x108] sm:$0xf]  ;;  %v894_v20 = vld [vmem:[%s1235_s1 + $0x114] sm:$0xf0] }
  0x10   : > { %v397_v21 = vpack.c.b16 %v357_v11, %v357_v11  ;;  %v787_v22 = vld [vmem:[%s1235_s1 + $0xa0] sm:$0xf]  ;;  %v881_v23 = vld [vmem:[%s1235_s1 + $0xac] sm:$0xf0]  ;;  %v879_v24 = vld [vmem:[%s1235_s1 + $0xa4] sm:$0xf]  ;;  %v836_v29 = vor.u32 %v893_v18, %v835_v15  ;;  %v844_v33 = vor.u32 %v894_v20, %v843_v19  ;;  %v358_v20 = vunpack.c.h.b16 %v960_v8 }
  0x11   : > { %v441_v25 = vsel %vm439_vm0, %v395_v16, 0  ;;  %v789_v26 = vld [vmem:[%s1235_s1 + $0xb0] sm:$0xf0]  ;;  %v827_v27 = vld [vmem:[%s1235_s1 + $0xe8] sm:$0xf]  ;;  %v788_v30 = vor.u32 %v881_v23, %v787_v22  ;;  %s855_s5 = sshll.u32 %s1239_s4, 3 }
  0x12   : > { %472 = vmatpush.bf16.msra.mxu1 %v441_v25  ;;  %v447_v28 = vsel %vm439_vm0, %v397_v21, 0  ;;  %453 = vmatpush.bf16.msra.mxu0 %v804_v12  ;;  %v890_v31 = vld [vmem:[%s1235_s1 + $0xf4] sm:$0xf0]  ;;  %v888_v32 = vld [vmem:[%s1235_s1 + $0xec] sm:$0xf]  ;;  %v792_v34 = vor.u32 %v879_v24, %v789_v26  ;;  %s1099_s8 = scalar_lea.vmem %s1234_s0, %s855_s5  ;;  %vm435_vm1 = vcmask 179200   ;;  %v356_v25 = vunpack.c.h.b16 %v954_v5 }
  0x13   : > { %528 = vmatpush.bf16.msra.mxu3 %v447_v28  ;;  %481 = vmatpush.bf16.msra.mxu2 %v808_v17  ;;  %v829_v35 = vld [vmem:[%s1235_s1 + $0xf8] sm:$0xf0]  ;;  %v771_v36 = vld [vmem:[%s1235_s1 + $0x80] sm:$0xf]  ;;  %v877_v37 = vld [vmem:[%s1235_s1 + $0x8c] sm:$0xf0]  ;;  %v828_v38 = vor.u32 %v890_v31, %v827_v27 }
  0x14   : > { %v832_v39 = vor.u32 %v888_v32, %v829_v35  ;;  %v875_v40 = vld [vmem:[%s1235_s1 + $0x84] sm:$0xf]  ;;  %v773_v41 = vld [vmem:[%s1235_s1 + $0x90] sm:$0xf0]  ;;  %v811_v42 = vld [vmem:[%s1235_s1 + $0xc8] sm:$0xf]  ;;  %v772_v46 = vor.u32 %v877_v37, %v771_v36  ;;  %v398_v32 = vpack.c.b16 %v358_v20, %v358_v20 }
  0x15   : > { %v886_v43 = vld [vmem:[%s1235_s1 + $0xd4] sm:$0xf0]  ;;  %v884_v44 = vld [vmem:[%s1235_s1 + $0xcc] sm:$0xf]  ;;  %v813_v45 = vld [vmem:[%s1235_s1 + $0xd8] sm:$0xf0]  ;;  %v776_v47 = vor.u32 %v875_v40, %v773_v41 }
  0x16   : > { %473 = vmatpush.bf16.msra.mxu1 %v836_v29  ;;  %454 = vmatpush.bf16.msra.mxu0 %v788_v30  ;;  %v755_v48 = vld [vmem:[%s1235_s1 + $0x60] sm:$0xf]  ;;  %v873_v49 = vld [vmem:[%s1235_s1 + $0x6c] sm:$0xf0]  ;;  %v812_v50 = vor.u32 %v886_v43, %v811_v42  ;;  %v816_v51 = vor.u32 %v884_v44, %v813_v45  ;;  %v871_v52 = vld [vmem:[%s1235_s1 + $0x64] sm:$0xf] }
  0x17   : > { %529 = vmatpush.bf16.msra.mxu3 %v844_v33  ;;  %482 = vmatpush.bf16.msra.mxu2 %v792_v34  ;;  %v757_v53 = vld [vmem:[%s1235_s1 + $0x70] sm:$0xf0]  ;;  %v795_v54 = vld [vmem:[%s1235_s1 + $0xa8] sm:$0xf]  ;;  %v882_v55 = vld [vmem:[%s1235_s1 + $0xb4] sm:$0xf0]  ;;  %v756_v58 = vor.u32 %v873_v49, %v755_v48 }
  0x18   : > { %v880_v56 = vld [vmem:[%s1235_s1 + $0xac] sm:$0xf]  ;;  %v797_v57 = vld [vmem:[%s1235_s1 + $0xb8] sm:$0xf0]  ;;  %v739_v59 = vld [vmem:[%s1235_s1 + $0x40] sm:$0xf]  ;;  %v760_v60 = vor.u32 %v871_v52, %v757_v53  ;;  %v796_v63 = vor.u32 %v882_v55, %v795_v54 }
  0x19   : > { %v869_v61 = vld [vmem:[%s1235_s1 + $0x4c] sm:$0xf0]  ;;  %v867_v62 = vld [vmem:[%s1235_s1 + $0x44] sm:$0xf]  ;;  %v800_v0 = vor.u32 %v880_v56, %v797_v57  ;;  %v741_v1 = vld [vmem:[%s1235_s1 + $0x50] sm:$0xf0] }
  0x1a   : > { %508 = vmatpush.bf16.msrb.mxu1 %v828_v38  ;;  %455 = vmatpush.bf16.msra.mxu0 %v772_v46  ;;  %v779_v2 = vld [vmem:[%s1235_s1 + $0x88] sm:$0xf]  ;;  %v878_v3 = vld [vmem:[%s1235_s1 + $0x94] sm:$0xf0]  ;;  %v876_v4 = vld [vmem:[%s1235_s1 + $0x8c] sm:$0xf]  ;;  %v740_v7 = vor.u32 %v869_v61, %v739_v59  ;;  %v744_v10 = vor.u32 %v867_v62, %v741_v1 }
  0x1b   : > { %536 = vmatpush.bf16.msrb.mxu3 %v832_v39  ;;  %483 = vmatpush.bf16.msra.mxu2 %v776_v47  ;;  %v781_v6 = vld [vmem:[%s1235_s1 + $0x98] sm:$0xf0]  ;;  %v723_v9 = vld [vmem:[%s1235_s1 + $0x20] sm:$0xf]  ;;  %v857_v11 = vld [vmem:[%s1099_s8 + $0x4] sm:$0xf]  ;;  %v780_v14 = vor.u32 %v878_v3, %v779_v2  ;;  %v396_v39 = vpack.c.b16 %v356_v25, %v356_v25 }
  0x1c   : > { %v701_v12 = vld [vmem:[%s1099_s8 + $0x8] sm:$0xf0]  ;;  %v865_v13 = vld [vmem:[%s1235_s1 + $0x2c] sm:$0xf0]  ;;  %v784_v15 = vor.u32 %v876_v4, %v781_v6  ;;  %v863_v17 = vld [vmem:[%s1235_s1 + $0x24] sm:$0xf] }
  0x1d   : > { %v1109_v16 = vor.u32 %v857_v11, %v701_v12  ;;  %v725_v18 = vld [vmem:[%s1235_s1 + $0x30] sm:$0xf0]  ;;  %v763_v19 = vld [vmem:[%s1235_s1 + $0x68] sm:$0xf]  ;;  %v874_v21 = vld [vmem:[%s1235_s1 + $0x74] sm:$0xf0]  ;;  %v724_v24 = vor.u32 %v865_v13, %v723_v9 }
  0x1e   : > { %509 = vmatpush.bf16.msrb.mxu1 %v812_v50  ;;  %456 = vmatpush.bf16.msra.mxu0 %v756_v58  ;;  %v872_v22 = vld [vmem:[%s1235_s1 + $0x6c] sm:$0xf]  ;;  %v765_v23 = vld [vmem:[%s1235_s1 + $0x78] sm:$0xf0]  ;;  %v728_v8 = vor.u32 %v863_v17, %v725_v18  ;;  %v707_v26 = vld [vmem:[%s1235_s1] sm:$0xf]  ;;  %v764_v28 = vor.u32 %v874_v21, %v763_v19 }
  0x1f   : > { %537 = vmatpush.bf16.msrb.mxu3 %v816_v51  ;;  %484 = vmatpush.bf16.msra.mxu2 %v760_v60  ;;  %v861_v27 = vld [vmem:[%s1235_s1 + $0xc] sm:$0xf0]  ;;  %v768_v29 = vor.u32 %v872_v22, %v765_v23  ;;  %v859_v5 = vld [vmem:[%s1235_s1 + $0x4] sm:$0xf]  ;;  %v709_v30 = vld [vmem:[%s1235_s1 + $0x10] sm:$0xf0] }
  0x20   : > { %851 = vmatmul.msk.bf16.vlgmr.msra.gmra.mxu3 %vm435_vm1, %v1109_v16  ;;  %849 = vmatmul.msk.bf16.vlgmr.msra.gmra.mxu1 %vm435_vm1, %v1109_v16  ;;  %v747_v31 = vld [vmem:[%s1235_s1 + $0x48] sm:$0xf]  ;;  %v870_v33 = vld [vmem:[%s1235_s1 + $0x54] sm:$0xf0]  ;;  %v868_v34 = vld [vmem:[%s1235_s1 + $0x4c] sm:$0xf]  ;;  %v708_v36 = vor.u32 %v861_v27, %v707_v26  ;;  %v712_v40 = vor.u32 %v859_v5, %v709_v30 }
  0x21   : > { %v749_v35 = vld [vmem:[%s1235_s1 + $0x58] sm:$0xf0]  ;;  %v699_v37 = vld [vmem:[%s1099_s8] sm:$0xf]  ;;  %v858_v38 = vld [vmem:[%s1099_s8 + $0x4] sm:$0xf0]  ;;  %v748_v42 = vor.u32 %v870_v33, %v747_v31 }
  0x22   : > { %510 = vmatpush.bf16.msrb.mxu1 %v796_v63  ;;  %457 = vmatpush.bf16.msra.mxu0 %v740_v7  ;;  %v731_v41 = vld [vmem:[%s1235_s1 + $0x28] sm:$0xf]  ;;  %v752_v43 = vor.u32 %v868_v34, %v749_v35  ;;  %v450_v44 = vsel %vm439_vm0, %v398_v32, 0  ;;  %v892_v45 = vld [vmem:[%s1235_s1 + $0x10c] sm:$0xf]  ;;  %v700_v47 = vor.u32 %v858_v38, %v699_v37  ;;  %v444_v51 = vsel %vm439_vm0, %v396_v39, 0 }
  0x23   : > { %538 = vmatpush.bf16.msrb.mxu3 %v800_v0  ;;  %485 = vmatpush.bf16.msra.mxu2 %v744_v10  ;;  %v845_v46 = vld [vmem:[%s1235_s1 + $0x118] sm:$0xf0]  ;;  %v866_v48 = vld [vmem:[%s1235_s1 + $0x34] sm:$0xf0]  ;;  %v864_v49 = vld [vmem:[%s1235_s1 + $0x2c] sm:$0xf] }
  0x24   : > { %v733_v50 = vld [vmem:[%s1235_s1 + $0x38] sm:$0xf0]  ;;  %v891_v52 = vld [vmem:[%s1235_s1 + $0x104] sm:$0xf]  ;;  %v837_v53 = vld [vmem:[%s1235_s1 + $0x110] sm:$0xf0]  ;;  %v848_v54 = vor.u32 %v892_v45, %v845_v46  ;;  %v732_v55 = vor.u32 %v866_v48, %v731_v41 }
  0x25   : > { %v736_v56 = vor.u32 %v864_v49, %v733_v50  ;;  %v715_v57 = vld [vmem:[%s1235_s1 + $0x8] sm:$0xf]  ;;  %v862_v58 = vld [vmem:[%s1235_s1 + $0x14] sm:$0xf0]  ;;  %v860_v59 = vld [vmem:[%s1235_s1 + $0xc] sm:$0xf]  ;;  %v840_v61 = vor.u32 %v891_v52, %v837_v53 }
  0x26   : > { %511 = vmatpush.bf16.msrb.mxu1 %v780_v14  ;;  %458 = vmatpush.bf16.msra.mxu0 %v724_v24  ;;  %v717_v60 = vld [vmem:[%s1235_s1 + $0x18] sm:$0xf0]  ;;  %v716_v62 = vor.u32 %v862_v58, %v715_v57  ;;  %v1206_v1 = vld [vmem:[%s1236_s2] sm:$0x77]  ;;  %v181_v9 = vld [vmem:[%s1236_s2 + $0x8] sm:$0x77] }
  0x27   : > { %539 = vmatpush.bf16.msrb.mxu3 %v784_v15  ;;  %486 = vmatpush.bf16.msra.mxu2 %v728_v8  ;;  %v720_v63 = vor.u32 %v860_v59, %v717_v60  ;;  %v224_v2 = vperm.slane %v1206_v1, 0  ;;  %v580_v11 = vperm.slane %v1206_v1, 1  ;;  %v600_v13 = vperm.slane %v1206_v1, 2  ;;  %s856_s21 = sshll.u32 %s1239_s4, 5 }
  0x28   : > { %v226_v14 = vperm.slane %v181_v9, 0  ;;  %v227_v25 = vperm.slane %v181_v9, 4  ;;  %s1218_s8 = scalar_lea.vmem %s1237_s3, %s856_s21  ;;  %v602_v5 = vperm.slane %v181_v9, 2  ;;  %v225_v33 = vperm.slane %v1206_v1, 4 }
  0x29   : > { %v232_v3 = vperm.slane %v224_v2, 0  ;;  %v608_v18 = vperm.slane %v600_v13, 2  ;;  %v581_v57 = vperm.slane %v1206_v1, 5 }
  0x2a   : > { %512 = vmatpush.bf16.msrb.mxu1 %v764_v28  ;;  %459 = vmatpush.bf16.msra.mxu0 %v708_v36  ;;  %v234_v20 = vperm.slane %v226_v14, 0  ;;  %v235_v32 = vperm.slane %v227_v25, 0  ;;  %v610_v38 = vperm.slane %v602_v5, 2  ;;  %v233_v45 = vperm.slane %v225_v33, 0 }
  0x2b   : > { %540 = vmatpush.bf16.msrb.mxu3 %v768_v29  ;;  %487 = vmatpush.bf16.msra.mxu2 %v712_v40  ;;  %v582_v29 = vperm.slane %v181_v9, 1 }
  0x2d   : > { %460 = vmatmul.bf16.vlgmr.msra.gmra.mxu0 %v700_v47  ;;  %v590_v36 = vperm.slane %v582_v29, 1 }
  0x2e   : > { %556 = vmatpush.bf16.msrb.mxu0 %v450_v44  ;;  %513 = vmatpush.bf16.msrb.mxu1 %v748_v42  ;;  %v583_v44 = vperm.slane %v181_v9, 5 }
  0x2f   : > { %541 = vmatpush.bf16.msrb.mxu3 %v752_v43  ;;  %500 = vmatpush.bf16.msrb.mxu2 %v444_v51 }
  0x30   : > { %488 = vmatmul.bf16.vlgmr.msra.gmra.mxu2 %v700_v47 }
  0x32   : > { %557 = vmatpush.bf16.msrb.mxu0 %v848_v54  ;;  %514 = vmatpush.bf16.msrb.mxu1 %v732_v55  ;;  %v591_v55 = vperm.slane %v583_v44, 1 }
  0x33   : > { %542 = vmatpush.bf16.msrb.mxu3 %v736_v56  ;;  %501 = vmatpush.bf16.msrb.mxu2 %v840_v61 }
  0x36   : > { %515 = vmatpush.bf16.msrb.mxu1 %v716_v62 }
  0x37   : > { %543 = vmatpush.bf16.msrb.mxu3 %v720_v63  ;;  %v601_v63 = vperm.slane %v1206_v1, 6 }
  0x39   : > { %516 = vmatmul.bf16.vlgmr.msrb.gmra.mxu1 %v700_v47  ;;  %v609_v14 = vperm.slane %v601_v63, 2 }
  0x3a   : > { %544 = vmatmul.bf16.vlgmr.msrb.gmra.mxu3 %v700_v47  ;;  %v603_v47 = vperm.slane %v181_v9, 6  ;;  %v589_v9 = vperm.slane %v581_v57, 1 }
  0x3c   : > { %v611_v60 = vperm.slane %v603_v47, 2 }
  0x3d   : > { %852 = vmatmul.msk.bf16.vlgmr.msrb.gmra.mxu0 %vm435_vm1, %v1109_v16 }
  0x40   : > { %850 = vmatmul.msk.bf16.vlgmr.msrb.gmra.mxu2 %vm435_vm1, %v1109_v16  ;;  %v588_v16 = vperm.slane %v580_v11, 1 }
  0x9d   : > { %v475_v0 = vpop.f32.mrf.mxu1 }
  0xa3   : > { %v531_v4 = vpop.f32.mrf.mxu3 }
  0xa5   : > { %v477_v7 = vpop.f32.mrf.mxu1 }
  0xaa   : > { %v461_v6 = vpop.f32.mrf.mxu0 }
  0xab   : > { %v462_v10 = vadd.f32 %v461_v6, %v232_v3  ;;  %v533_v21 = vpop.f32.mrf.mxu3 }
  0xad   : > { %v476_v12 = vadd.f32 %v475_v0, %v462_v10 }
  0xaf   : > { %v564_v15 = vmul.f32 0.01, %v476_v12 }
  0xb1   : > { %v572_v17 = vmax.f32 %v476_v12, %v564_v15 }
  0xb2   : > { %v463_v22 = vpop.f32.mrf.mxu0 }
  0xb3   : > { %v489_v19 = vpop.f32.mrf.mxu2  ;;  %v592_v23 = vmul.f32 %v588_v16, %v572_v17  ;;  %v464_v24 = vadd.f32 %v463_v22, %v232_v3 }
  0xb4   : > { %v490_v56 = vadd.f32 %v489_v19, %v233_v45 }
  0xb5   : > { %v612_v26 = vadd.f32 %v608_v18, %v592_v23  ;;  %v478_v27 = vadd.f32 %v477_v7, %v464_v24 }
  0xb6   : > { %v517_v8 = vpop.f32.mrf.mxu1 }
  0xb7   : > { %v518_v28 = vadd.f32 %v517_v8, %v234_v20  ;;  %620 = vst [vmem:[%s1218_s8] sm:$0xff] %v612_v26  ;;  %v568_v30 = vmul.f32 0.01, %v478_v27 }
  0xb9   : > { %v532_v31 = vadd.f32 %v531_v4, %v518_v28  ;;  %v576_v34 = vmax.f32 %v478_v27, %v568_v30 }
  0xba   : > { %v559_v40 = vpop.f32.mrf.mxu0 }
  0xbb   : > { %v566_v35 = vmul.f32 0.01, %v532_v31  ;;  %v491_v37 = vpop.f32.mrf.mxu2  ;;  %v596_v41 = vmul.f32 %v588_v16, %v576_v34 }
  0xbc   : > { %v492_v1 = vadd.f32 %v491_v37, %v233_v45 }
  0xbd   : > { %v545_v39 = vpop.f32.mrf.mxu3  ;;  %v574_v42 = vmax.f32 %v532_v31, %v566_v35  ;;  %v616_v48 = vadd.f32 %v608_v18, %v596_v41 }
  0xbe   : > { %v546_v43 = vadd.f32 %v545_v39, %v235_v32  ;;  %v519_v46 = vpop.f32.mrf.mxu1 }
  0xbf   : > { %v594_v49 = vmul.f32 %v590_v36, %v574_v42  ;;  %v520_v50 = vadd.f32 %v519_v46, %v234_v20  ;;  %624 = vst [vmem:[%s1218_s8 + $0x20] sm:$0xff] %v616_v48 }
  0xc0   : > { %v560_v51 = vadd.f32 %v559_v40, %v546_v43 }
  0xc1   : > { %v614_v52 = vadd.f32 %v610_v38, %v594_v49  ;;  %v534_v53 = vadd.f32 %v533_v21, %v520_v50 }
  0xc2   : > { %v567_v54 = vmul.f32 0.01, %v560_v51  ;;  %v561_v2 = vpop.f32.mrf.mxu0 }
  0xc3   : > { %622 = vst [vmem:[%s1218_s8 + $0x10] sm:$0xff] %v614_v52  ;;  %v570_v58 = vmul.f32 0.01, %v534_v53  ;;  %v503_v61 = vpop.f32.mrf.mxu2 }
  0xc4   : > { %v575_v59 = vmax.f32 %v560_v51, %v567_v54  ;;  %v504_v62 = vadd.f32 %v503_v61, %v490_v56 }
  0xc5   : > { %v547_v0 = vpop.f32.mrf.mxu3  ;;  %v578_v3 = vmax.f32 %v534_v53, %v570_v58 }
  0xc6   : > { %v595_v4 = vmul.f32 %v591_v55, %v575_v59  ;;  %v548_v6 = vadd.f32 %v547_v0, %v235_v32  ;;  %v565_v7 = vmul.f32 0.01, %v504_v62 }
  0xc7   : > { %v598_v10 = vmul.f32 %v590_v36, %v578_v3 }
  0xc8   : > { %v615_v11 = vadd.f32 %v611_v60, %v595_v4  ;;  %v562_v12 = vadd.f32 %v561_v2, %v548_v6  ;;  %v573_v13 = vmax.f32 %v504_v62, %v565_v7 }
  0xc9   : > { %v618_v15 = vadd.f32 %v610_v38, %v598_v10 }
  0xca   : > { %623 = vst [vmem:[%s1218_s8 + $0x18] sm:$0xff] %v615_v11  ;;  %v571_v16 = vmul.f32 0.01, %v562_v12  ;;  %v593_v17 = vmul.f32 %v589_v9, %v573_v13 }
  0xcb   : > { %626 = vst [vmem:[%s1218_s8 + $0x30] sm:$0xff] %v618_v15  ;;  %v505_v19 = vpop.f32.mrf.mxu2 }
  0xcc   : > { %v579_v18 = vmax.f32 %v562_v12, %v571_v16  ;;  %v613_v20 = vadd.f32 %v609_v14, %v593_v17  ;;  %v506_v21 = vadd.f32 %v505_v19, %v492_v1 }
  0xce   : > { %v599_v22 = vmul.f32 %v591_v55, %v579_v18  ;;  %621 = vst [vmem:[%s1218_s8 + $0x8] sm:$0xff] %v613_v20  ;;  %v569_v23 = vmul.f32 0.01, %v506_v21 }
  0xd0   : > { %v619_v24 = vadd.f32 %v611_v60, %v599_v22  ;;  %v577_v25 = vmax.f32 %v506_v21, %v569_v23 }
  0xd2   : > { %627 = vst [vmem:[%s1218_s8 + $0x38] sm:$0xff] %v619_v24  ;;  %v597_v8 = vmul.f32 %v589_v9, %v577_v25 }
  0xd4   : > { %v617_v26 = vadd.f32 %v609_v14, %v597_v8 }
  0xd6   : > { %625 = vst [vmem:[%s1218_s8 + $0x28] sm:$0xff] %v617_v26 }
  0xd7 PF: > { %s13_s12 = sadd.s32 1, %s909_s12  }
  0xd8   : > { %p10_p4 = scmp.ge.s32.totalorder %s13_s12, 4  }
  0xda   :  { %12 = sbr.rel (!%p10_p4) target bundleno = 1 (0x1), region = 62 }

</bundles_post_ra>
